<compile_context>
chip_gen: v5e
topology: v5e:2x2
jax: 0.10.0
libtpu: 0.0.40
codegen_flags: <defaults>
</compile_context>

<pallas_src>
import functools

import jax
import jax.numpy as jnp
from jax.experimental import pallas as pl
from jax.experimental.pallas import tpu as pltpu

# Synthetic problem constants consistent with the PyTorch module.
EDGES_NUM = 8
FU_FEATURES = int(EDGES_NUM * 1.5)        # 12
FC_IN = FU_FEATURES * 4 + 2               # 50
BN_EPS = 1e-5                             # PyTorch BatchNorm1d default eps


def tsnet_kernel(g_ref, xs_ref, wbdT_ref, bbdT_ref, wfT_ref, wgT_ref,
                 biasT_ref, qT_ref):
    # g_ref    : (2, TB)   int32 g, cast to f32 in-kernel (free VPU filler)
    # xs_ref   : (4E, TB)  packed feature-major states [bw; pd; cp; sc]
    # wbdT_ref : (4F, 4E)  block-diagonal branch weights, transposed
    # bbdT_ref : (4F, 1)   branch biases (pre-ReLU, not foldable)
    # wfT_ref  : (E, 4F)   final-Linear rows for branch outputs, BN scale folded
    # wgT_ref  : (E, 2)    final-Linear rows for g
    # biasT_ref: (E, 1)    b_fc + BN-shift fold
    # qT_ref   : (E, TB)   q^T output (lane-dense: TB on the lane axis)
    #
    # NOTE: a partial final batch tile (B % TB != 0) relies on Pallas OOB
    # masking; garbage padded columns only feed discarded output columns — do
    # not add any cross-batch (lane-axis) reduction here.
    h = jnp.dot(wbdT_ref[...], xs_ref[...],
                preferred_element_type=jnp.float32)            # (4F, TB)
    h = jnp.maximum(h + bbdT_ref[...], 0.0)                    # branch ReLU

    acc = jnp.dot(wfT_ref[...], h,
                  preferred_element_type=jnp.float32)          # (E, TB)

    # g contribution: two broadcast-FMAs on the VPU instead of a K=2 MXU push.
    gf = g_ref[...].astype(jnp.float32)                        # (2, TB)
    wgT = wgT_ref[...]                                         # (E, 2)
    acc = acc + wgT[:, 0:1] * gf[0:1, :] + wgT[:, 1:2] * gf[1:2, :]

    qT_ref[...] = jnp.maximum(acc + biasT_ref[...], 0.0)       # final ReLU


def _pick_tile(B, tb):
    """Batch tile: full-array block for small B, else a multiple of 128."""
    if B <= tb:
        return B
    return max(128, (tb // 128) * 128)


@functools.partial(jax.jit, static_argnames=("tb",))
def tsnet_forward(g, bw, pd, cp, sc, kparams, *, tb=2048):
    """Pallas TSNet forward. Returns q of shape (B, EDGES_NUM)."""
    B, E = bw.shape
    F = FU_FEATURES
    TB = _pick_tile(B, tb)
    grid = (pl.cdiv(B, TB),)

    # Wrapper-side packing: one contiguous feature-major slab (4E, B).
    xs = jnp.concatenate([bw, pd, cp, sc], axis=1).T           # (4E, B) f32
    gT = g.T                                                   # (2, B)  int32

    def act(rows):
        return pl.BlockSpec((rows, TB), lambda i: (0, i))

    def resident(arr):
        return pl.BlockSpec(arr.shape, lambda i: (0, 0))       # weights stay in VMEM

    cost = pl.CostEstimate(
        flops=2 * B * (4 * E * 4 * F + 4 * F * E + 2 * E),
        transcendentals=0,
        bytes_accessed=4 * B * (4 * E + 2 + E)
        + 4 * (4 * F * 4 * E + 4 * F + E * 4 * F + 2 * E + E),
    )

    qT = pl.pallas_call(
        tsnet_kernel,
        out_shape=jax.ShapeDtypeStruct((E, B), jnp.float32),
        grid=grid,
        in_specs=[
            act(2),                        # g^T (int32)
            act(4 * E),                    # packed states
            resident(kparams["wbdT"]),
            resident(kparams["bbdT"]),
            resident(kparams["wfT"]),
            resident(kparams["wgT"]),
            resident(kparams["biasT"]),
        ],
        out_specs=act(E),                  # lane-dense q^T tile
        compiler_params=pltpu.CompilerParams(
            dimension_semantics=("parallel",)),   # shards batch across v7x TCs
        cost_estimate=cost,
    )(gT, xs, kparams["wbdT"], kparams["bbdT"], kparams["wfT"],
      kparams["wgT"], kparams["biasT"])

    return qT.T                            # back to module layout (B, E)


def init_params(key):
    """Deterministic synthetic module parameters (shapes from TSNet.__init__)."""
    E, F = EDGES_NUM, FU_FEATURES
    ks = jax.random.split(key, 8)
    # Branch Linears: Linear(EDGES_NUM, FU_FEATURES), stored transposed (E, F).
    w4 = 0.3 * jax.random.normal(ks[0], (4, E, F), jnp.float32)
    b4 = 0.1 * jax.random.normal(ks[1], (4, 1, F), jnp.float32)
    # BatchNorm1d(FU_FEATURES) params / running stats (eval mode).
    gamma = 1.0 + 0.1 * jax.random.normal(ks[2], (4, 1, F), jnp.float32)
    beta = 0.1 * jax.random.normal(ks[3], (4, 1, F), jnp.float32)
    rmean = 0.1 * jax.random.normal(ks[4], (4, 1, F), jnp.float32)
    rvar = 1.0 + 0.5 * jax.random.uniform(ks[5], (4, 1, F), jnp.float32)
    # Final Linear(FC_IN, EDGES_NUM), stored transposed (FC_IN, E).
    w_fc = 0.3 * jax.random.normal(ks[6], (FC_IN, E), jnp.float32)
    b_fc = 0.1 * jax.random.normal(ks[7], (1, E), jnp.float32)
    return dict(w4=w4, b4=b4, gamma=gamma, beta=beta, rmean=rmean, rvar=rvar,
                w_fc=w_fc, b_fc=b_fc)
    # NOTE: self.fc_config and TS_EPSILON are never used in forward(); omitted.


def fold_params(p):
    """Glue-side algebra: fold BN, block-diagonalize + transpose for the kernel."""
    E, F = EDGES_NUM, FU_FEATURES
    s4 = p["gamma"] / jnp.sqrt(p["rvar"] + BN_EPS)         # (4,1,F) BN scale
    t4 = p["beta"] - p["rmean"] * s4                       # (4,1,F) BN shift
    # Block-diagonal branch weight, transposed: (4F, 4E).
    wbdT = jnp.zeros((4 * F, 4 * E), jnp.float32)
    for n in range(4):
        wbdT = wbdT.at[n * F:(n + 1) * F, n * E:(n + 1) * E].set(p["w4"][n].T)
    bbdT = p["b4"].reshape(4 * F, 1)                       # (4F, 1)
    # Final Linear split to match concat order (g, bw, pd, cp, sc); BN scale
    # folded into the branch rows, BN shift folded into the bias.
    wgT = p["w_fc"][:2].T                                  # (E, 2)
    wf4 = p["w_fc"][2:].reshape(4, F, E)                   # (4, F, E)
    wfT = (s4.reshape(4, F, 1) * wf4).reshape(4 * F, E).T  # (E, 4F)
    biasT = (p["b_fc"] + jnp.einsum("nif,nfe->ie", t4, wf4)).T   # (E, 1)
    return dict(wbdT=wbdT, bbdT=bbdT, wfT=wfT, wgT=wgT, biasT=biasT)


def tsnet_reference(g, bw, pd, cp, sc, p):
    """Pure-JAX reference mirroring the PyTorch forward (eval mode) exactly."""
    def branch(x, n):
        h = x @ p["w4"][n] + p["b4"][n]                       # Linear
        h = jnp.maximum(h, 0.0)                               # ReLU
        return ((h - p["rmean"][n]) / jnp.sqrt(p["rvar"][n] + BN_EPS)
                ) * p["gamma"][n] + p["beta"][n]              # BatchNorm1d (eval)
    outs = [branch(x, n) for n, x in enumerate([bw, pd, cp, sc])]
    inp = jnp.concatenate([g.astype(jnp.float32)] + outs, axis=1)   # (B, FC_IN)
    return jnp.maximum(inp @ p["w_fc"] + p["b_fc"], 0.0)            # Linear+ReLU


if __name__ == "__main__":
    key = jax.random.PRNGKey(0)
    kp, kdata = jax.random.split(key)
    params = init_params(kp)
    kparams = fold_params(params)

    def make_inputs(k, B):
        kb, kpd, kc, ks_, kg = jax.random.split(k, 5)
        bw = jax.random.uniform(kb, (B, EDGES_NUM), jnp.float32)
        pd = jax.random.uniform(kpd, (B, EDGES_NUM), jnp.float32)
        cp = jax.random.uniform(kc, (B, EDGES_NUM), jnp.float32)
        sc = jax.random.uniform(ks_, (B, EDGES_NUM), jnp.float32)
        # g: (B, 2) IntTensor of (bit_rate_i, resolution_i)
        g = jax.random.randint(kg, (B, 2), 0, 4, jnp.int32)
        return g, bw, pd, cp, sc

    # Small case (matches choose_action-style batch).
    g, bw, pd, cp, sc = make_inputs(kdata, 2)
    q = jax.block_until_ready(tsnet_forward(g, bw, pd, cp, sc, kparams))
    q_ref = tsnet_reference(g, bw, pd, cp, sc, params)
    assert q.shape == (2, EDGES_NUM)
    assert jnp.allclose(q, q_ref, atol=1e-5, rtol=1e-5)

    # Larger batch: tb=512 -> 4 tiles, so each v7x TensorCore gets >=2 tiles
    # and the input/output DMAs pipeline against compute.
    g, bw, pd, cp, sc = make_inputs(jax.random.fold_in(kdata, 1), 2048)
    q = jax.block_until_ready(tsnet_forward(g, bw, pd, cp, sc, kparams, tb=512))
    q_ref = tsnet_reference(g, bw, pd, cp, sc, params)
    assert q.shape == (2048, EDGES_NUM)
    assert jnp.allclose(q, q_ref, atol=1e-4, rtol=1e-4)

    print("KERNEL_OK")
</pallas_src>

<mosaic_0001>
module attributes {stable_mosaic.version = 11 : i64} {
  func.func @tsnet_kernel(%arg0: i32, %arg1: memref<2x2xi32, #tpu.memory_space<vmem>>, %arg2: memref<32x2xf32, #tpu.memory_space<vmem>>, %arg3: memref<48x32xf32, #tpu.memory_space<vmem>>, %arg4: memref<48x1xf32, #tpu.memory_space<vmem>>, %arg5: memref<8x48xf32, #tpu.memory_space<vmem>>, %arg6: memref<8x2xf32, #tpu.memory_space<vmem>>, %arg7: memref<8x1xf32, #tpu.memory_space<vmem>>, %arg8: memref<8x2xf32, #tpu.memory_space<vmem>>) attributes {dimension_semantics = [#tpu.dimension_semantics<parallel>], iteration_bounds = array<i64: 1>, scalar_prefetch = 0 : i64, scratch_operands = 0 : i64, tpu.core_type = #tpu.core_type<tc>, window_params = [{transform_indices = @transform_0, window_bounds = array<i64: 2, 2>}, {transform_indices = @transform_1, window_bounds = array<i64: 32, 2>}, {pipeline_mode = #tpu.pipeline_mode<synchronous>, transform_indices = @transform_2, window_bounds = array<i64: 48, 32>}, {pipeline_mode = #tpu.pipeline_mode<synchronous>, transform_indices = @transform_3, window_bounds = array<i64: 48, 1>}, {pipeline_mode = #tpu.pipeline_mode<synchronous>, transform_indices = @transform_4, window_bounds = array<i64: 8, 48>}, {pipeline_mode = #tpu.pipeline_mode<synchronous>, transform_indices = @transform_5, window_bounds = array<i64: 8, 2>}, {pipeline_mode = #tpu.pipeline_mode<synchronous>, transform_indices = @transform_6, window_bounds = array<i64: 8, 1>}, {transform_indices = @transform_7, window_bounds = array<i64: 8, 2>}]} {
    %c0 = arith.constant 0 : index
    %c0_0 = arith.constant 0 : index
    %0 = vector.load %arg3[%c0, %c0_0] : memref<48x32xf32, #tpu.memory_space<vmem>>, vector<48x32xf32>
    %c0_1 = arith.constant 0 : index
    %c0_2 = arith.constant 0 : index
    %1 = vector.load %arg2[%c0_1, %c0_2] : memref<32x2xf32, #tpu.memory_space<vmem>>, vector<32x2xf32>
    %cst = arith.constant dense<0.000000e+00> : vector<48x2xf32>
    %2 = tpu.matmul %0, %1, %cst {dimension_numbers = #tpu.dot_dimension_numbers<[1], [0], [0], [1], [0, 0, 1, 1], [], []>} : vector<48x32xf32>, vector<32x2xf32>, vector<48x2xf32> -> vector<48x2xf32>
    %c0_3 = arith.constant 0 : index
    %c0_4 = arith.constant 0 : index
    %3 = vector.load %arg4[%c0_3, %c0_4] : memref<48x1xf32, #tpu.memory_space<vmem>>, vector<48x1xf32>
    %4 = vector.broadcast %3 : vector<48x1xf32> to vector<48x2xf32>
    %5 = arith.addf %2, %4 : vector<48x2xf32>
    %cst_5 = arith.constant 0.000000e+00 : f32
    %6 = vector.broadcast %cst_5 : f32 to vector<48x2xf32>
    %7 = arith.maximumf %5, %6 : vector<48x2xf32>
    %c0_6 = arith.constant 0 : index
    %c0_7 = arith.constant 0 : index
    %8 = vector.load %arg5[%c0_6, %c0_7] : memref<8x48xf32, #tpu.memory_space<vmem>>, vector<8x48xf32>
    %cst_8 = arith.constant dense<0.000000e+00> : vector<8x2xf32>
    %9 = tpu.matmul %8, %7, %cst_8 {dimension_numbers = #tpu.dot_dimension_numbers<[1], [0], [0], [1], [0, 0, 1, 1], [], []>} : vector<8x48xf32>, vector<48x2xf32>, vector<8x2xf32> -> vector<8x2xf32>
    %c0_9 = arith.constant 0 : index
    %c0_10 = arith.constant 0 : index
    %10 = vector.load %arg1[%c0_9, %c0_10] : memref<2x2xi32, #tpu.memory_space<vmem>>, vector<2x2xi32>
    %11 = arith.sitofp %10 : vector<2x2xi32> to vector<2x2xf32>
    %c0_11 = arith.constant 0 : index
    %c0_12 = arith.constant 0 : index
    %12 = vector.load %arg6[%c0_11, %c0_12] : memref<8x2xf32, #tpu.memory_space<vmem>>, vector<8x2xf32>
    %13 = vector.extract_strided_slice %12 {offsets = [0, 0], sizes = [8, 1], strides = [1, 1]} : vector<8x2xf32> to vector<8x1xf32>
    %14 = vector.extract_strided_slice %11 {offsets = [0, 0], sizes = [1, 2], strides = [1, 1]} : vector<2x2xf32> to vector<1x2xf32>
    %15 = vector.broadcast %13 : vector<8x1xf32> to vector<8x2xf32>
    %16 = vector.broadcast %14 : vector<1x2xf32> to vector<8x2xf32>
    %17 = arith.mulf %15, %16 : vector<8x2xf32>
    %18 = arith.addf %9, %17 : vector<8x2xf32>
    %19 = vector.extract_strided_slice %12 {offsets = [0, 1], sizes = [8, 1], strides = [1, 1]} : vector<8x2xf32> to vector<8x1xf32>
    %20 = vector.extract_strided_slice %11 {offsets = [1, 0], sizes = [1, 2], strides = [1, 1]} : vector<2x2xf32> to vector<1x2xf32>
    %21 = vector.broadcast %19 : vector<8x1xf32> to vector<8x2xf32>
    %22 = vector.broadcast %20 : vector<1x2xf32> to vector<8x2xf32>
    %23 = arith.mulf %21, %22 : vector<8x2xf32>
    %24 = arith.addf %18, %23 : vector<8x2xf32>
    %c0_13 = arith.constant 0 : index
    %c0_14 = arith.constant 0 : index
    %25 = vector.load %arg7[%c0_13, %c0_14] : memref<8x1xf32, #tpu.memory_space<vmem>>, vector<8x1xf32>
    %26 = vector.broadcast %25 : vector<8x1xf32> to vector<8x2xf32>
    %27 = arith.addf %24, %26 : vector<8x2xf32>
    %cst_15 = arith.constant 0.000000e+00 : f32
    %28 = vector.broadcast %cst_15 : f32 to vector<8x2xf32>
    %29 = arith.maximumf %27, %28 : vector<8x2xf32>
    %c0_16 = arith.constant 0 : index
    %c0_17 = arith.constant 0 : index
    %30 = vector.load %arg8[%c0_16, %c0_17] : memref<8x2xf32, #tpu.memory_space<vmem>>, vector<8x2xf32>
    tpu.vector_store %arg8[%c0_16, %c0_17], %29 {strides = array<i32>} : memref<8x2xf32, #tpu.memory_space<vmem>>, vector<8x2xf32>,
    return
  }
  func.func @transform_0(%arg0: i32) -> (i32, i32) {
    %c0_i32 = arith.constant 0 : i32
    %c0_i32_0 = arith.constant 0 : i32
    return %c0_i32, %arg0 : i32, i32
  }
  func.func @transform_1(%arg0: i32) -> (i32, i32) {
    %c0_i32 = arith.constant 0 : i32
    %c0_i32_0 = arith.constant 0 : i32
    return %c0_i32, %arg0 : i32, i32
  }
  func.func @transform_2(%arg0: i32) -> (i32, i32) {
    %c0_i32 = arith.constant 0 : i32
    %c0_i32_0 = arith.constant 0 : i32
    %c0_i32_1 = arith.constant 0 : i32
    return %c0_i32, %c0_i32_0 : i32, i32
  }
  func.func @transform_3(%arg0: i32) -> (i32, i32) {
    %c0_i32 = arith.constant 0 : i32
    %c0_i32_0 = arith.constant 0 : i32
    %c0_i32_1 = arith.constant 0 : i32
    return %c0_i32, %c0_i32_0 : i32, i32
  }
  func.func @transform_4(%arg0: i32) -> (i32, i32) {
    %c0_i32 = arith.constant 0 : i32
    %c0_i32_0 = arith.constant 0 : i32
    %c0_i32_1 = arith.constant 0 : i32
    return %c0_i32, %c0_i32_0 : i32, i32
  }
  func.func @transform_5(%arg0: i32) -> (i32, i32) {
    %c0_i32 = arith.constant 0 : i32
    %c0_i32_0 = arith.constant 0 : i32
    %c0_i32_1 = arith.constant 0 : i32
    return %c0_i32, %c0_i32_0 : i32, i32
  }
  func.func @transform_6(%arg0: i32) -> (i32, i32) {
    %c0_i32 = arith.constant 0 : i32
    %c0_i32_0 = arith.constant 0 : i32
    %c0_i32_1 = arith.constant 0 : i32
    return %c0_i32, %c0_i32_0 : i32, i32
  }
  func.func @transform_7(%arg0: i32) -> (i32, i32) {
    %c0_i32 = arith.constant 0 : i32
    %c0_i32_0 = arith.constant 0 : i32
    return %c0_i32, %arg0 : i32, i32
  }
}

</mosaic_0001>

<bundles_post_ra>
// kernel: tsnet_forward.1
= control target key start
LH: loop header
LB: loop body
LE: loop exit
PB: predicated region body
PF: predicated region fallthrough
CT: control target
= control target key end

     0   :  { %v209_v2 = vmov 0   ;;  %vm72_vm0 = vcmask 261120   ;;  %v210_v19 = vmov 1   ;;  %vm143_vm1 = vcmask 392192   ;;  %s320_s1 = inlined_call_operand.vmem [shape: f32[32,2], index: 1, kind: input, shape index: {}]   ;;  %s321_s3 = inlined_call_operand.vmem [shape: f32[48,1], index: 3, kind: input, shape index: {}]   ;;  %s322_s2 = inlined_call_operand.vmem [shape: f32[48,32], index: 2, kind: input, shape index: {}]   ;;  %s323_s5 = inlined_call_operand.vmem [shape: f32[8,2], index: 5, kind: input, shape index: {}]   ;;  %s324_s6 = inlined_call_operand.vmem [shape: f32[8,1], index: 6, kind: input, shape index: {}]   ;;  %s325_s4 = inlined_call_operand.vmem [shape: f32[8,48], index: 4, kind: input, shape index: {}]   ;;  %s326_s0 = inlined_call_operand.vmem [shape: s32[2,2], index: 0, kind: input, shape index: {}]   ;;  %s327_s7 = inlined_call_operand.vmem [shape: f32[8,2], index: 7, kind: output, shape index: {}]  }
   0x1   :  { %v35_v0 = vld [vmem:[%s320_s1 + $0x18] sm:$0xff]  ;;  %v34_v1 = vld [vmem:[%s320_s1 + $0x10] sm:$0xff]  ;;  %205 = vset.pattern.permute.xlu0 %v209_v2  ;;  %206 = vset.pattern.permute.xlu1 %v209_v2  ;;  %v33_v3 = vld [vmem:[%s320_s1 + $0x8] sm:$0xff]  ;;  %vm182_vm2 = vcmask 15360  }
   0x2   :  { %195 = vmatpush.msra.mxu2 %v35_v0  ;;  %196 = vmatpush.msra.mxu3 %v35_v0  ;;  %v41_v4 = vld [vmem:[%s321_s3 + $0x28] sm:$0xff]  ;;  %v39_v5 = vld [vmem:[%s321_s3 + $0x18] sm:$0xff]  ;;  %v32_v6 = vld [vmem:[%s320_s1] sm:$0xff] }
   0x3   :  { %103 = vmatpush.msra.mxu0 %v35_v0  ;;  %207 = vset.pattern.permute.xlu2 %v209_v2  ;;  %v28_v7 = vld [vmem:[%s322_s2 + $0x10] sm:$0xff]  ;;  %v30_v8 = vld [vmem:[%s322_s2 + $0x20] sm:$0xff]  ;;  %v37_v9 = vld [vmem:[%s321_s3 + $0x8] sm:$0xff] }
   0x4   :  { %197 = vmatpush.msra.mxu2 %v34_v1  ;;  %198 = vmatpush.msra.mxu3 %v34_v1  ;;  %v26_v10 = vld [vmem:[%s322_s2] sm:$0xff]  ;;  %v38_v12 = vld [vmem:[%s321_s3 + $0x10] sm:$0xff]  ;;  %v29_v13 = vld [vmem:[%s322_s2 + $0x18] sm:$0xff] }
   0x5   :  { %69 = vperm.xlu0 %205, %v41_v4   ;;  %104 = vmatpush.msra.mxu0 %v34_v1  ;;  %v40_v11 = vld [vmem:[%s321_s3 + $0x20] sm:$0xff]  ;;  %v31_v14 = vld [vmem:[%s322_s2 + $0x28] sm:$0xff] }
   0x6   :  { %199 = vmatpush.msra.mxu2 %v33_v3  ;;  %200 = vmatpush.msra.mxu3 %v33_v3  ;;  %v36_v15 = vld [vmem:[%s321_s3] sm:$0xff]  ;;  %v27_v16 = vld [vmem:[%s322_s2 + $0x8] sm:$0xff] }
   0x7   :  { %105 = vmatpush.msra.mxu0 %v33_v3  ;;  %59 = vperm.xlu1 %206, %v39_v5   ;;  %v135_v17 = vld [vmem:[%s323_s5] sm:$0xff] }
   0x8   :  { %201 = vmatpush.msra.mxu2 %v32_v6  ;;  %202 = vmatpush.msra.mxu3 %v32_v6  ;;  %v174_v18 = vld [vmem:[%s324_s6] sm:$0xff] }
   0x9   :  { %190 = vmatmul.msk.f32.vlgmr.msra.gmra.mxu2 %vm72_vm0, %v28_v7  ;;  %192 = vmatmul.msk.f32.vlgmr.msra.gmra.mxu3 %vm72_vm0, %v30_v8  ;;  %v132_v44 = vld [vmem:[%s325_s4] sm:$0xff] }
   0xa   :  { %106 = vmatpush.msra.mxu0 %v32_v6  ;;  %49 = vperm.xlu2 %207, %v37_v9   ;;  %v133_v45 = vld [vmem:[%s326_s0] sm:$0x3] }
   0xb   :  { %188 = vmatmul.msk.f32.vlgmr.msra.gmra.mxu0 %vm72_vm0, %v26_v10  ;;  %v134_v46 = vcvt.s32.f32 %v133_v45 }
   0xd   :  { %64 = vperm.xlu0 %205, %v40_v11   ;;  %v141_v47 = vperm.slane %v134_v46, 0  ;;  %v171_v48 = vperm.slane %v134_v46, 1 }
   0xf   :  { %54 = vperm.xlu1 %206, %v38_v12  }
  0x11   :  { %191 = vmatmul.msk.f32.gmra.mxu2 %vm72_vm0, %v29_v13  ;;  %193 = vmatmul.msk.f32.gmra.mxu3 %vm72_vm0, %v31_v14 }
  0x12   :  { %44 = vperm.xlu2 %207, %v36_v15  }
  0x13   :  { %189 = vmatmul.msk.f32.gmra.mxu0 %vm72_vm0, %v27_v16 }
  0x15   :  { %138 = vperm.xlu0 %205, %v135_v17  }
  0x17   :  { %208 = vset.pattern.permute.xlu1 %v210_v19 }
  0x18   :  { %168 = vperm.xlu1 %208, %v135_v17  }
  0x1a   :  { %177 = vperm.xlu2 %207, %v174_v18  }
  0x64   :  { %v50_v25 = vpop.permute.xlu2 %49 }
  0x6c   :  { %v45_v39 = vpop.permute.xlu2 %44 }
  0x74   :  { %v178_v56 = vpop.permute.xlu2 %177 }
  0x77   :  { %v70_v20 = vpop.permute.xlu0 %69 }
  0x79   :  { %v60_v21 = vpop.permute.xlu1 %59 }
  0x7f   :  { %v65_v26 = vpop.permute.xlu0 %64 }
  0x81   :  { %v55_v31 = vpop.permute.xlu1 %54 }
  0x87   :  { %v139_v49 = vpop.permute.xlu0 %138 }
  0x88   :  { %v108_v24 = vpop.f32.mrf.mxu0  ;;  %v142_v51 = vmul.f32 %v141_v47, %v139_v49 }
  0x89   :  { %v109_v40 = vadd.f32 %v108_v24, %v45_v39 }
  0x8a   :  { %v169_v50 = vpop.permute.xlu1 %168 }
  0x8b   :  { %v126_v43 = vmax.f32 %v109_v40, 0.0  ;;  %v172_v52 = vmul.f32 %v171_v48, %v169_v50 }
  0x8c   :  { %v114_v22 = vpop.f32.mrf.mxu2  ;;  %v120_v23 = vpop.f32.mrf.mxu3 }
  0x8d   :  { %v121_v29 = vadd.f32 %v120_v23, %v65_v26  ;;  %v115_v36 = vadd.f32 %v114_v22, %v55_v31 }
  0x8f   :  { %v130_v35 = vmax.f32 %v121_v29, 0.0  ;;  %v128_v41 = vmax.f32 %v115_v36, 0.0 }
  0x90   :  { %v111_v34 = vpop.f32.mrf.mxu0 }
  0x91   :  { %v112_v38 = vadd.f32 %v111_v34, %v50_v25 }
  0x93   :  { %v127_v42 = vmax.f32 %v112_v38, 0.0 }
  0x94   :  { %v117_v27 = vpop.f32.mrf.mxu2  ;;  %v123_v28 = vpop.f32.mrf.mxu3 }
  0x95   :  { %v124_v30 = vadd.f32 %v123_v28, %v70_v20  ;;  %v118_v32 = vadd.f32 %v117_v27, %v60_v21 }
  0x97   :  { %v131_v33 = vmax.f32 %v124_v30, 0.0  ;;  %v129_v37 = vmax.f32 %v118_v32, 0.0 }
  0x99   :  { %157 = vmatpush.msra.mxu1 %v131_v33 }
  0x9b   :  { %158 = vmatpush.msra.mxu1 %v130_v35 }
  0x9d   :  { %159 = vmatpush.msra.mxu1 %v129_v37 }
  0x9f   :  { %160 = vmatpush.msra.mxu1 %v128_v41 }
  0xa1   :  { %161 = vmatpush.msra.mxu1 %v127_v42 }
  0xa3   :  { %162 = vmatpush.msra.mxu1 %v126_v43 }
  0xa4   :  { %194 = vmatmul.msk.f32.vlgmr.msra.gmra.mxu1 %vm143_vm1, %v132_v44 }
 0x121   :  { %v164_v53 = vpop.f32.mrf.mxu1 }
 0x122   :  { %v165_v54 = vadd.f32 %v164_v53, %v142_v51 }
 0x124   :  { %v173_v55 = vadd.f32 %v172_v52, %v165_v54 }
 0x126   :  { %v180_v57 = vadd.f32 %v178_v56, %v173_v55 }
 0x128   :  { %v181_v58 = vmax.f32 %v180_v57, 0.0 }
 0x12a   :  { %183 = vst.msk [vmem:[%s327_s7] sm:$0xff] %vm182_vm2, %v181_v58 }

</bundles_post_ra>
